<compile_context>
chip_gen: v6e
topology: v6e:2x2x1
jax: 0.10.0
libtpu: 0.0.40
codegen_flags: <defaults>
</compile_context>

<pallas_src>
import math
import functools

import jax
import jax.numpy as jnp
from jax import lax
from jax.experimental import pallas as pl
from jax.experimental.pallas import tpu as pltpu


_LANE = 128
_SUBLANE = 8
_NEG_INF = -1e30


# ------------------------------ kernel -------------------------------------

def _attn_kernel(q_ref, k_ref, v_ref, out_ref, *, scale, t_actual):
    """Attention over one block of G heads.

    q_ref/out_ref: [G, C, Tq]  (Tq = 8 for the pooled path, Tp for full path)
    k_ref/v_ref:   [G, C, Ts]  (Ts = lane-padded key length)
    """
    # Fold the combined 1/sqrt(ch) scale into q: C*Tq elements instead of the
    # Tq*Ts logits (same semantics as scaling q and k each by ch**-0.25).
    q = q_ref[...] * scale
    k = k_ref[...]
    v = v_ref[...]

    # logits[g, t, s] = sum_c q[g, c, t] * k[g, c, s]
    # (contraction axes expressed directly -> no materialized transposes).
    logits = lax.dot_general(
        q, k,
        dimension_numbers=(((1,), (1,)), ((0,), (0,))),
        preferred_element_type=jnp.float32,
    )  # [G, Tq, Ts] f32

    ts = logits.shape[-1]
    if t_actual != ts:
        # Additive key-padding bias from a tiny (1, 1, Ts) iota; single
        # broadcast add over the logits (padded query columns are dropped in
        # the wrapper, so they only need to stay finite).
        key_idx = lax.broadcasted_iota(jnp.int32, (1, 1, ts), 2)
        logits = logits + jnp.where(key_idx < t_actual, 0.0, _NEG_INF)

    m = jnp.max(logits, axis=-1, keepdims=True)
    p = jnp.exp(logits - m)
    denom = jnp.sum(p, axis=-1, keepdims=True)
    inv = pl.reciprocal(denom, approx=True)            # EUP slot, frees VALU
    w = (p * inv).astype(v.dtype)                      # match torch cast back

    # out[g, c, t] = sum_s v[g, c, s] * w[g, t, s]
    out = lax.dot_general(
        v, w,
        dimension_numbers=(((2,), (2,)), ((0,), (0,))),
        preferred_element_type=jnp.float32,
    )  # [G, C, Tq]

    out_ref[...] = out.astype(out_ref.dtype)


# --------------------------- sizing helpers ---------------------------------

def _vmem_limit_bytes():
    # Raise the scoped-VMEM cap but stay well under physical VMEM so the same
    # setting is safe on v7x (64 MiB) and v5e/v6e (128 MiB).
    try:
        cap = pltpu.get_tpu_info().vmem_capacity_bytes
        return int(min(96 * 1024 * 1024, cap * 3 // 4))
    except Exception:
        return 64 * 1024 * 1024


def _num_tensorcores():
    """Best-effort TensorCore count (1 on v5e/v6e, 2 on v7x). Defaults to 1."""
    try:
        info = pltpu.get_tpu_info()
        for attr in ("num_cores", "tensorcore_count", "num_tensorcores",
                     "core_count"):
            n = getattr(info, attr, None)
            if n:
                return int(n)
    except Exception:
        pass
    try:
        return max(1, int(getattr(jax.devices()[0], "num_cores", 1)))
    except Exception:
        return 1


def _pick_heads_per_block(num_bh, ch, tq, ts, itemsize, vmem_budget,
                          min_steps=1):
    """Largest divisor G of num_bh whose working set fits the VMEM budget.

    Working set = double-buffered q/out ([G,C,Tq]) and k/v ([G,C,Ts]) blocks
    plus ~4 live f32 [G,Tq,Ts] temporaries (logits, p, w, slack).
    Prefers a step count that is a multiple of `min_steps` (load-balances the
    two TensorCores on v7x); on single-TC chips min_steps=1 so the largest
    fitting G wins.
    """
    divisors = [g for g in range(1, num_bh + 1) if num_bh % g == 0]

    def fits(g):
        io = 2 * itemsize * g * ch * (2 * tq + 2 * ts)   # double-buffered blocks
        tmp = 4 * 4 * g * tq * ts                        # f32 temporaries
        return io + tmp <= vmem_budget

    fitting = [g for g in divisors if fits(g)] or [1]
    preferred = [g for g in fitting if (num_bh // g) % min_steps == 0]
    return max(preferred) if preferred else max(fitting)


# ------------------------------ wrappers ------------------------------------

def _split_qkv(qkv, n_heads):
    """QKVAttention split order: chunk(3, dim=1) first, then heads."""
    bs, width, length = qkv.shape
    assert width % (3 * n_heads) == 0
    ch = width // (3 * n_heads)
    bh = bs * n_heads
    qkv_r = qkv.reshape(bs, 3, n_heads, ch, length)
    q = qkv_r[:, 0].reshape(bh, ch, length)
    k = qkv_r[:, 1].reshape(bh, ch, length)
    v = qkv_r[:, 2].reshape(bh, ch, length)
    return q, k, v, ch, bh


def _pad_last(x, target):
    if x.shape[-1] == target:
        return x
    return jnp.pad(x, ((0, 0), (0, 0), (0, target - x.shape[-1])))


def _attention_core(q, k, v, *, ch, t_actual):
    """Run the Pallas attention kernel. q: [BH, C, Tq], k/v: [BH, C, Ts]."""
    bh, _, tq = q.shape
    ts = k.shape[-1]
    itemsize = q.dtype.itemsize

    vmem_limit = _vmem_limit_bytes()
    budget = max(8 * 1024 * 1024, int(vmem_limit * 0.6))
    min_steps = 2 if _num_tensorcores() > 1 else 1
    g = _pick_heads_per_block(bh, ch, tq, ts, itemsize, budget, min_steps)
    grid = (bh // g,)

    kernel = functools.partial(
        _attn_kernel, scale=1.0 / math.sqrt(ch), t_actual=t_actual)

    flops = 4 * bh * ch * tq * ts                   # two matmuls
    bytes_accessed = itemsize * (q.size + k.size + v.size + bh * ch * tq)

    out = pl.pallas_call(
        kernel,
        out_shape=jax.ShapeDtypeStruct((bh, ch, tq), q.dtype),
        grid_spec=pltpu.PrefetchScalarGridSpec(
            num_scalar_prefetch=0,
            grid=grid,
            in_specs=[
                pl.BlockSpec((g, ch, tq), lambda b: (b, 0, 0)),
                pl.BlockSpec((g, ch, ts), lambda b: (b, 0, 0)),
                pl.BlockSpec((g, ch, ts), lambda b: (b, 0, 0)),
            ],
            out_specs=pl.BlockSpec((g, ch, tq), lambda b: (b, 0, 0)),
        ),
        compiler_params=pltpu.CompilerParams(
            dimension_semantics=("parallel",),
            vmem_limit_bytes=vmem_limit,
        ),
        cost_estimate=pl.CostEstimate(
            flops=flops,
            transcendentals=bh * tq * ts,
            bytes_accessed=bytes_accessed,
        ),
    )(q, k, v)
    return out


def qkv_attention(qkv, n_heads):
    """QKVAttention.forward (attention_weights=None path) as a Pallas kernel.

    :param qkv: [N, 3*H*C, T] (q, k, v chunked along channels, heads inside).
    :return:    [N, H*C, T] after attention.
    """
    bs, _, length = qkv.shape
    q, k, v, ch, _ = _split_qkv(qkv, n_heads)

    # Lane-pad T so key/value blocks are lane-dense.
    t_pad = pl.cdiv(length, _LANE) * _LANE
    q = _pad_last(q, t_pad)
    k = _pad_last(k, t_pad)
    v = _pad_last(v, t_pad)

    out = _attention_core(q, k, v, ch=ch, t_actual=length)   # [BH, C, Tp]
    return out[:, :, :length].reshape(bs, n_heads * ch, length)


def qkv_attention_token0(qkv, n_heads):
    """Attention output for query token 0 only -> [N, H*C].

    Used by AttentionPool2d, where only the mean-token output is consumed:
    the query axis shrinks from T to 8 (sublane-padded), cutting the
    exp/softmax/second-matmul work by ~T/8.
    """
    bs, _, length = qkv.shape
    q, k, v, ch, _ = _split_qkv(qkv, n_heads)

    t_pad = pl.cdiv(length, _LANE) * _LANE
    k = _pad_last(k, t_pad)
    v = _pad_last(v, t_pad)
    # Keep only query token 0, pad the query axis to 8 (padded query columns
    # stay finite inside the kernel and are dropped here).
    q0 = _pad_last(q[:, :, :1], _SUBLANE)                     # [BH, C, 8]

    out = _attention_core(q0, k, v, ch=ch, t_actual=length)   # [BH, C, 8]
    return out[:, :, 0].reshape(bs, n_heads * ch)


def attention_pool_2d(x, params, num_heads):
    """AttentionPool2d.forward; attention core runs in Pallas (query-token-0
    path), the 1x1-conv projections / mean-pool / positional-embedding glue
    stay as XLA matmuls. c_proj is applied to token 0 only since only
    y[:, :, 0] is returned."""
    b, c = x.shape[0], x.shape[1]
    x = x.reshape(b, c, -1)                                         # [B, C, HW]
    x = jnp.concatenate([x.mean(axis=-1, keepdims=True), x], -1)    # [B, C, T]
    x = x + params["pos_emb"][None].astype(x.dtype)
    qkv = (jnp.einsum("oc,bct->bot", params["qkv_w"], x)
           + params["qkv_b"][None, :, None])                        # 1x1 conv
    a0 = qkv_attention_token0(qkv, num_heads)                       # [B, H*C]
    y0 = jnp.einsum("oc,bc->bo", params["c_w"], a0) + params["c_b"][None]
    return y0


# ----------------------------- references ----------------------------------

def _qkv_attention_ref(qkv, n_heads):
    """Pure-JAX mirror of the PyTorch QKVAttention.forward."""
    bs, width, length = qkv.shape
    ch = width // (3 * n_heads)
    q, k, v = jnp.split(qkv, 3, axis=1)
    q = q.reshape(bs * n_heads, ch, length)
    k = k.reshape(bs * n_heads, ch, length)
    v = v.reshape(bs * n_heads, ch, length)
    scale = 1.0 / math.sqrt(math.sqrt(ch))
    w = jnp.einsum("bct,bcs->bts", q * scale, k * scale)
    w = jax.nn.softmax(w.astype(jnp.float32), axis=-1).astype(w.dtype)
    a = jnp.einsum("bts,bcs->bct", w, v)
    return a.reshape(bs, -1, length)


def _attention_pool_2d_ref(x, params, num_heads):
    b, c = x.shape[0], x.shape[1]
    x = x.reshape(b, c, -1)
    x = jnp.concatenate([x.mean(axis=-1, keepdims=True), x], -1)
    x = x + params["pos_emb"][None].astype(x.dtype)
    qkv = (jnp.einsum("oc,bct->bot", params["qkv_w"], x)
           + params["qkv_b"][None, :, None])
    a = _qkv_attention_ref(qkv, num_heads)
    y = (jnp.einsum("oc,bct->bot", params["c_w"], a)
         + params["c_b"][None, :, None])
    return y[:, :, 0]


if __name__ == "__main__":
    # Small AttentionPool2d config:
    #   batch=2, embed_dim=32, num_heads_channels=16 -> num_heads=2,
    #   spacial_dim=8 -> T = 8*8 + 1 = 65 (keys lane-padded to 128).
    batch, embed_dim, head_ch, spacial = 2, 32, 16, 8
    num_heads = embed_dim // head_ch
    out_dim = embed_dim
    T = spacial * spacial + 1

    key = jax.random.PRNGKey(0)
    kx, kp, kq, kc, kt = jax.random.split(key, 5)
    x = jax.random.normal(kx, (batch, embed_dim, spacial, spacial), jnp.float32)
    params = dict(
        pos_emb=jax.random.normal(kp, (embed_dim, T), jnp.float32) / embed_dim ** 0.5,
        qkv_w=jax.random.normal(kq, (3 * embed_dim, embed_dim), jnp.float32) / embed_dim ** 0.5,
        qkv_b=jnp.zeros((3 * embed_dim,), jnp.float32),
        c_w=jax.random.normal(kc, (out_dim, embed_dim), jnp.float32) / embed_dim ** 0.5,
        c_b=jnp.zeros((out_dim,), jnp.float32),
    )

    # Full-module check (pooled query-token-0 kernel path).
    out = jax.block_until_ready(attention_pool_2d(x, params, num_heads))
    ref = _attention_pool_2d_ref(x, params, num_heads)
    assert out.shape == (batch, out_dim)
    # Tolerance covers the EUP approximate reciprocal in the kernel softmax and
    # f32 accumulation-order differences.
    assert jnp.allclose(out, ref, atol=1e-2, rtol=1e-2), float(
        jnp.max(jnp.abs(out - ref)))

    # Standalone attention-kernel check (general full-T query path).
    qkv_test = jax.random.normal(kt, (batch, 3 * embed_dim, T), jnp.float32)
    att = jax.block_until_ready(qkv_attention(qkv_test, num_heads))
    att_ref = _qkv_attention_ref(qkv_test, num_heads)
    assert att.shape == att_ref.shape
    assert jnp.allclose(att, att_ref, atol=1e-2, rtol=1e-2), float(
        jnp.max(jnp.abs(att - att_ref)))

    print("KERNEL_OK")
</pallas_src>

<mosaic_0001>
module attributes {stable_mosaic.version = 11 : i64} {
  func.func @_attn_kernel(%arg0: i32, %arg1: memref<4x16x8xf32, #tpu.memory_space<vmem>>, %arg2: memref<4x16x128xf32, #tpu.memory_space<vmem>>, %arg3: memref<4x16x128xf32, #tpu.memory_space<vmem>>, %arg4: memref<4x16x8xf32, #tpu.memory_space<vmem>>) attributes {dimension_semantics = [#tpu.dimension_semantics<parallel>], iteration_bounds = array<i64: 1>, scalar_prefetch = 0 : i64, scratch_operands = 0 : i64, tpu.core_type = #tpu.core_type<tc>, window_params = [{transform_indices = @transform_0, window_bounds = array<i64: 4, 16, 8>}, {transform_indices = @transform_1, window_bounds = array<i64: 4, 16, 128>}, {transform_indices = @transform_2, window_bounds = array<i64: 4, 16, 128>}, {transform_indices = @transform_3, window_bounds = array<i64: 4, 16, 8>}]} {
    %c0 = arith.constant 0 : index
    %c0_0 = arith.constant 0 : index
    %c0_1 = arith.constant 0 : index
    %0 = vector.load %arg1[%c0, %c0_0, %c0_1] : memref<4x16x8xf32, #tpu.memory_space<vmem>>, vector<4x16x8xf32>
    %cst = arith.constant 2.500000e-01 : f32
    %1 = vector.broadcast %cst : f32 to vector<4x16x8xf32>
    %2 = arith.mulf %0, %1 : vector<4x16x8xf32>
    %c0_2 = arith.constant 0 : index
    %c0_3 = arith.constant 0 : index
    %c0_4 = arith.constant 0 : index
    %3 = vector.load %arg2[%c0_2, %c0_3, %c0_4] : memref<4x16x128xf32, #tpu.memory_space<vmem>>, vector<4x16x128xf32>
    %c0_5 = arith.constant 0 : index
    %c0_6 = arith.constant 0 : index
    %c0_7 = arith.constant 0 : index
    %4 = vector.load %arg3[%c0_5, %c0_6, %c0_7] : memref<4x16x128xf32, #tpu.memory_space<vmem>>, vector<4x16x128xf32>
    %cst_8 = arith.constant dense<0.000000e+00> : vector<4x8x128xf32>
    %5 = tpu.matmul %2, %3, %cst_8 {dimension_numbers = #tpu.dot_dimension_numbers<[1], [1], [2], [2], [0, 0, 0, 2, 1, 2], [0], [0]>} : vector<4x16x8xf32>, vector<4x16x128xf32>, vector<4x8x128xf32> -> vector<4x8x128xf32>
    %6 = tpu.iota {dimensions = array<i32: 2>} : vector<1x1x128xi32>
    %c65_i32 = arith.constant 65 : i32
    %7 = vector.broadcast %c65_i32 : i32 to vector<1x1x128xi32>
    %8 = arith.cmpi slt, %6, %7 : vector<1x1x128xi32>
    %cst_9 = arith.constant 0.000000e+00 : f32
    %cst_10 = arith.constant -1.000000e+30 : f32
    %9 = vector.broadcast %cst_9 : f32 to vector<1x1x128xf32>
    %10 = vector.broadcast %cst_10 : f32 to vector<1x1x128xf32>
    %11 = arith.select %8, %9, %10 : vector<1x1x128xi1>, vector<1x1x128xf32>
    %12 = vector.broadcast %11 : vector<1x1x128xf32> to vector<4x8x128xf32>
    %13 = arith.addf %5, %12 : vector<4x8x128xf32>
    %cst_11 = arith.constant dense<0xFF800000> : vector<4x8xf32>
    %14 = vector.multi_reduction <maximumf>, %13, %cst_11 [2] : vector<4x8x128xf32> to vector<4x8xf32>
    %15 = vector.shape_cast %14 : vector<4x8xf32> to vector<4x8x1xf32>
    %16 = vector.broadcast %15 : vector<4x8x1xf32> to vector<4x8x128xf32>
    %17 = arith.subf %13, %16 : vector<4x8x128xf32>
    %18 = math.exp %17 : vector<4x8x128xf32>
    %cst_12 = arith.constant dense<0.000000e+00> : vector<4x8xf32>
    %19 = vector.multi_reduction <add>, %18, %cst_12 [2] : vector<4x8x128xf32> to vector<4x8xf32>
    %20 = vector.shape_cast %19 : vector<4x8xf32> to vector<4x8x1xf32>
    %21 = tpu.reciprocal %20 {approx = true} : vector<4x8x1xf32> -> vector<4x8x1xf32>
    %22 = vector.broadcast %21 : vector<4x8x1xf32> to vector<4x8x128xf32>
    %23 = arith.mulf %18, %22 : vector<4x8x128xf32>
    %cst_13 = arith.constant dense<0.000000e+00> : vector<4x16x8xf32>
    %24 = tpu.matmul %4, %23, %cst_13 {dimension_numbers = #tpu.dot_dimension_numbers<[2], [2], [1], [1], [0, 0, 0, 1, 1, 1], [0], [0]>} : vector<4x16x128xf32>, vector<4x8x128xf32>, vector<4x16x8xf32> -> vector<4x16x8xf32>
    %c0_14 = arith.constant 0 : index
    %c0_15 = arith.constant 0 : index
    %c0_16 = arith.constant 0 : index
    %25 = vector.load %arg4[%c0_14, %c0_15, %c0_16] : memref<4x16x8xf32, #tpu.memory_space<vmem>>, vector<4x16x8xf32>
    tpu.vector_store %arg4[%c0_14, %c0_15, %c0_16], %24 {strides = array<i32>} : memref<4x16x8xf32, #tpu.memory_space<vmem>>, vector<4x16x8xf32>,
    return
  }
  func.func @transform_0(%arg0: i32) -> (i32, i32, i32) {
    %c0_i32 = arith.constant 0 : i32
    %c0_i32_0 = arith.constant 0 : i32
    %c0_i32_1 = arith.constant 0 : i32
    return %arg0, %c0_i32, %c0_i32_0 : i32, i32, i32
  }
  func.func @transform_1(%arg0: i32) -> (i32, i32, i32) {
    %c0_i32 = arith.constant 0 : i32
    %c0_i32_0 = arith.constant 0 : i32
    %c0_i32_1 = arith.constant 0 : i32
    return %arg0, %c0_i32, %c0_i32_0 : i32, i32, i32
  }
  func.func @transform_2(%arg0: i32) -> (i32, i32, i32) {
    %c0_i32 = arith.constant 0 : i32
    %c0_i32_0 = arith.constant 0 : i32
    %c0_i32_1 = arith.constant 0 : i32
    return %arg0, %c0_i32, %c0_i32_0 : i32, i32, i32
  }
  func.func @transform_3(%arg0: i32) -> (i32, i32, i32) {
    %c0_i32 = arith.constant 0 : i32
    %c0_i32_0 = arith.constant 0 : i32
    %c0_i32_1 = arith.constant 0 : i32
    return %arg0, %c0_i32, %c0_i32_0 : i32, i32, i32
  }
}

</mosaic_0001>

<bundles_post_ra>
// kernel: tpu_custom_call.1
= control target key start
LH: loop header
LB: loop body
LE: loop exit
PB: predicated region body
PF: predicated region fallthrough
CT: control target
= control target key end

     0   :  { %8 = vsyncpa [#allocation3], 0  ;;  %s955_s12 = smov [#allocation2]   ;;  %s1072_s0 = inlined_call_operand.vmem [shape: f32[4,16,8], index: 0, kind: input, shape index: {}]   ;;  %s1073_s1 = inlined_call_operand.vmem [shape: f32[4,16,128], index: 1, kind: input, shape index: {}]   ;;  %s1074_s2 = inlined_call_operand.hbm [shape: f32[4,16,128], index: 2, kind: input, shape index: {}]   ;;  %s1075_s3 = inlined_call_operand.vmem [shape: f32[4,16,8], index: 3, kind: output, shape index: {}]  }
   0x1   :  { %s18_s13 = sshll.u32 %s955_s12, 4  ;;  %s19_s13 = int_to_ptr.vmem [resolvable:$true] %s18_s13 }
   0x2   :  { %s941_s14 = scalar_lea.vmem %s19_s13, 1024  ;;  %p946_p1 = scmp.lt.s32.totalorder %s19_s13, %s19_s13 }
   0x3   :  { %p942_p0 = scmp.ne.s32.totalorder %s19_s13, %s941_s14  ;;  %p947_p2 = scmp.lt.s32.totalorder %s941_s14, %s941_s14 }
   0x5   :  { %p948_p3 = por %p947_p2, %p946_p1 }
   0x7   :  { %p949_p4 = pnand %p948_p3, %p942_p0 }
   0x9   :  { %952 = shalt.err (!%p949_p4)
}
   0xa   :  { %s956_s15 = smov 128   ;;  %s957_s16 = smov 8  }
   0xb   :  { %24 = dma.hbm_to_vmem [thread:$0]  %s1074_s2, 1024, %s19_s13, [#allocation3], %s956_s15, %s956_s15, %s957_s16  }
   0xc   :  { %953 = dma.done.wait [#allocation3], 1024  }
   0xd   :  { %954 = vsyncadd [#allocation3], 4294966272  ;;  %v958_v0 = vmov 0.0   ;;  %vm959_vm0 = vmmov 0   ;;  %v30_v1 = vld [vmem:[%s1072_s0 + $0x10] sm:$0xff]  ;;  %v28_v2 = vld [vmem:[%s1072_s0] sm:$0xff]  ;;  %v60_v29 = vlaneseq }
   0xe   :  { %863 = vmatprep.subr.mxu0 %v958_v0  ;;  %870 = vmatprep.subr.mxu1 %v958_v0  ;;  %v31_v3 = vld [vmem:[%s1072_s0 + $0x18] sm:$0xff]  ;;  %v38_v4 = vmul.f32 0.25, %v30_v1  ;;  %v36_v5 = vmul.f32 0.25, %v28_v2  ;;  %v29_v6 = vld [vmem:[%s1072_s0 + $0x8] sm:$0xff]  ;;  %v44_v11 = vld [vmem:[%s1073_s1] sm:$0xff]  ;;  %vm96_vm1 = vcmask 130048  }
   0xf   :  { %867 = vmatprep.mubr.msk.f32.mxu0 %vm959_vm0, %v958_v0  ;;  %874 = vmatprep.mubr.msk.f32.mxu1 %vm959_vm0, %v958_v0  ;;  %v45_v7 = vld [vmem:[%s1073_s1 + $0x8] sm:$0xff]  ;;  %v39_v8 = vmul.f32 0.25, %v31_v3  ;;  %v37_v9 = vmul.f32 0.25, %v29_v6  ;;  %v47_v10 = vld [vmem:[%s1073_s1 + $0x18] sm:$0xff]  ;;  %v32_v12 = vld [vmem:[%s1072_s0 + $0x20] sm:$0xff]  ;;  %v61_v30 = vand.u32 127, %v60_v29 }
  0x10   :  { %170 = vxpose.xlu1.b32.start [1/2] (short) (narrow) %v38_v4, 8  ;;  %64 = vxpose.xlu0.b32.start [1/2] (short) (narrow) %v36_v5, 8  ;;  %v34_v13 = vld [vmem:[%s1072_s0 + $0x30] sm:$0xff]  ;;  %v40_v15 = vmul.f32 0.25, %v32_v12  ;;  %v33_v17 = vld [vmem:[%s1072_s0 + $0x28] sm:$0xff]  ;;  %v35_v18 = vld [vmem:[%s1072_s0 + $0x38] sm:$0xff] }
  0x11   :  { %864 = vmatpush3.msra.mxu0 %v45_v7  ;;  %871 = vmatpush3.msra.mxu1 %v47_v10  ;;  %v46_v14 = vld [vmem:[%s1073_s1 + $0x10] sm:$0xff]  ;;  %v42_v16 = vmul.f32 0.25, %v34_v13  ;;  %v41_v19 = vmul.f32 0.25, %v33_v17  ;;  %v43_v20 = vmul.f32 0.25, %v35_v18  ;;  %v49_v21 = vld [vmem:[%s1073_s1 + $0x28] sm:$0xff]  ;;  %v51_v24 = vld [vmem:[%s1073_s1 + $0x38] sm:$0xff] }
  0x12   :  { %865 = vmatprep.subr.mxu0 %v958_v0  ;;  %872 = vmatprep.subr.mxu1 %v958_v0  ;;  %v48_v25 = vld [vmem:[%s1073_s1 + $0x20] sm:$0xff]  ;;  %v50_v26 = vld [vmem:[%s1073_s1 + $0x30] sm:$0xff]  ;;  %vm62_vm2 = vcmp.lt.s32.totalorder %v61_v30, 65  ;;  %v960_v31 = vmov -1e+30   ;;  %v55_v7 = vld [vmem:[#allocation2 + $0x18] sm:$0xff] }
  0x13   :  { %866 = vmatpush3.msra.mxu0 %v44_v11  ;;  %873 = vmatpush3.msra.mxu1 %v46_v14  ;;  %v63_v32 = vsel %vm62_vm2, 0.0, %v960_v31  ;;  %v52_v61 = vld [vmem:[#allocation2] sm:$0xff]  ;;  %v54_v62 = vld [vmem:[#allocation2 + $0x10] sm:$0xff]  ;;  %v57_v14 = vld [vmem:[#allocation2 + $0x28] sm:$0xff]  ;;  %vm821_vm3 = vcmask 64512  }
  0x14   :  { %171 = vxpose.xlu1.b32.end [2/2] (short) (narrow) %v39_v8, 8  ;;  %65 = vxpose.xlu0.b32.end [2/2] (short) (narrow) %v37_v9, 8  ;;  %v53_v8 = vld [vmem:[#allocation2 + $0x8] sm:$0xff]  ;;  %v58_v9 = vld [vmem:[#allocation2 + $0x30] sm:$0xff]  ;;  %v56_v10 = vld [vmem:[#allocation2 + $0x20] sm:$0xff] }
  0x15   :  { %877 = vmatprep.subr.mxu0 %v958_v0  ;;  %884 = vmatprep.subr.mxu1 %v958_v0 }
  0x18   :  { %275 = vxpose.xlu0.b32.start [1/2] (short) (narrow) %v40_v15, 8  ;;  %380 = vxpose.xlu1.b32.start [1/2] (short) (narrow) %v42_v16, 8  ;;  %v59_v16 = vld [vmem:[#allocation2 + $0x38] sm:$0xff] }
  0x1c   :  { %276 = vxpose.xlu0.b32.end [2/2] (short) (narrow) %v41_v19, 8  ;;  %381 = vxpose.xlu1.b32.end [2/2] (short) (narrow) %v43_v20, 8 }
  0x8c   :  { %v186_v22 = vpop.trf.xlu1  ;;  %v80_v23 = vpop.trf.xlu0 }
  0x8d   :  { %868 = vmatmul.mubr.msk.f32.vlgmr.msra.gmra.mxu0 %vm96_vm1, %v80_v23  ;;  %875 = vmatmul.mubr.msk.f32.vlgmr.msra.gmra.mxu1 %vm96_vm1, %v186_v22 }
  0x8e   :  { %878 = vmatpush3.msra.mxu0 %v49_v21  ;;  %881 = vmatprep.mubr.msk.f32.mxu0 %vm959_vm0, %v958_v0 }
  0x8f   :  { %879 = vmatprep.subr.mxu0 %v958_v0  ;;  %885 = vmatpush3.msra.mxu1 %v51_v24 }
  0x90   :  { %880 = vmatpush3.msra.mxu0 %v48_v25  ;;  %886 = vmatprep.subr.mxu1 %v958_v0 }
  0x91   :  { %887 = vmatpush3.msra.mxu1 %v50_v26  ;;  %888 = vmatprep.mubr.msk.f32.mxu1 %vm959_vm0, %v958_v0 }
  0x94   :  { %v291_v27 = vpop.trf.xlu0  ;;  %v396_v28 = vpop.trf.xlu1 }
  0x95   :  { %882 = vmatmul.mubr.msk.f32.vlgmr.msra.gmra.mxu0 %vm96_vm1, %v291_v27  ;;  %889 = vmatmul.mubr.msk.f32.vlgmr.msra.gmra.mxu1 %vm96_vm1, %v396_v28 }
  0x96   :  { %893 = vmatprep.mubr.f32.mxu0 %v52_v61  ;;  %898 = vmatprep.mubr.f32.mxu1 %v54_v62 }
 0x14d   :  { %v166_v33 = vpop.f32.mrf.mxu0  ;;  %v271_v34 = vpop.f32.mrf.mxu1 }
 0x14e   :  { %v167_v35 = vadd.f32 %v166_v33, %v63_v32  ;;  %v272_v36 = vadd.f32 %v271_v34, %v63_v32 }
 0x14f   :  { %v869_v37 = vpop.f32.mrf.mxu0  ;;  %v876_v38 = vpop.f32.mrf.mxu1 }
 0x150   :  { %487 = vmax.xlane.f32.xlu1 %v272_v36  ;;  %485 = vmax.xlane.f32.xlu0 %v167_v35 }
 0x155   :  { %v376_v39 = vpop.f32.mrf.mxu0  ;;  %v481_v40 = vpop.f32.mrf.mxu1 }
 0x156   :  { %v377_v41 = vadd.f32 %v376_v39, %v63_v32  ;;  %v482_v44 = vadd.f32 %v481_v40, %v63_v32 }
 0x157   :  { %v883_v42 = vpop.f32.mrf.mxu0  ;;  %v890_v43 = vpop.f32.mrf.mxu1 }
 0x158   :  { %489 = vmax.xlane.f32.xlu1 %v377_v41 }
 0x15c   :  { %491 = vmax.xlane.f32.xlu1 %v482_v44 }
 0x1d9   :  { %v488_v45 = vpop.xlane.xlu1 %487  ;;  %v486_v46 = vpop.xlane.xlu0 %485 }
 0x1da   :  { %v494_v47 = vsub.f32 %v272_v36, %v488_v45  ;;  %v493_v48 = vsub.f32 %v167_v35, %v486_v46 }
 0x1dc   :  { %v499_v49 = vmul.f32 1.442695, %v494_v47  ;;  %v497_v50 = vmul.f32 1.442695, %v493_v48 }
 0x1de   :  { %917 = vpow2.f32 %v499_v49 }
 0x1df   :  { %919 = vpow2.f32 %v497_v50 }
 0x1e1   :  { %v490_v51 = vpop.xlane.xlu1 %489 }
 0x1e2   :  { %v495_v52 = vsub.f32 %v377_v41, %v490_v51 }
 0x1e4   :  { %v501_v53 = vmul.f32 1.442695, %v495_v52 }
 0x1e5   :  { %v492_v54 = vpop.xlane.xlu1 %491 }
 0x1e6   :  { %921 = vpow2.f32 %v501_v53  ;;  %v496_v55 = vsub.f32 %v482_v44, %v492_v54 }
 0x1e8   :  { %v503_v56 = vmul.f32 1.442695, %v496_v55 }
 0x1ea   :  { %923 = vpow2.f32 %v503_v56 }
 0x1eb   :  { %v918_v57 = vpop.eup %917 }
 0x1ec   :  { %v920_v58 = vpop.eup %919  ;;  %507 = vadd.xlane.f32.xlu1 %v918_v57 }
 0x1ed   :  { %505 = vadd.xlane.f32.xlu0 %v920_v58 }
 0x1f3   :  { %v922_v59 = vpop.eup %921 }
 0x1f4   :  { %509 = vadd.xlane.f32.xlu0 %v922_v59 }
 0x1f7   :  { %v924_v60 = vpop.eup %923 }
 0x1f8   :  { %511 = vadd.xlane.f32.xlu1 %v924_v60 }
 0x275   :  { %v508_v63 = vpop.xlane.xlu1 %507 }
 0x276   :  { %925 = vrcp.f32 %v508_v63  ;;  %v506_v0 = vpop.xlane.xlu0 %505 }
 0x277   :  { %927 = vrcp.f32 %v506_v0 }
 0x27d   :  { %v510_v1 = vpop.xlane.xlu0 %509 }
 0x27e   :  { %929 = vrcp.f32 %v510_v1 }
 0x281   :  { %v512_v2 = vpop.xlane.xlu1 %511 }
 0x282   :  { %931 = vrcp.f32 %v512_v2 }
 0x283   :  { %v926_v3 = vpop.eup %925 }
 0x284   :  { %v928_v4 = vpop.eup %927  ;;  %v518_v5 = vmul.f32 %v926_v3, %v918_v57 }
 0x285   :  { %v517_v6 = vmul.f32 %v928_v4, %v920_v58 }
 0x286   :  { %896 = vmatprep.subr.mxu1 %v518_v5 }
 0x287   :  { %891 = vmatprep.subr.mxu0 %v517_v6  ;;  %897 = vmatpush3.xpose.msra.mxu1 %v518_v5 }
 0x288   :  { %892 = vmatpush3.xpose.msra.mxu0 %v517_v6 }
 0x28a   :  { %899 = vmatmul.mubr.f32.vlgmr.msra.gmra.mxu1 %v55_v7 }
 0x28b   :  { %v930_v11 = vpop.eup %929  ;;  %894 = vmatmul.mubr.f32.vlgmr.msra.gmra.mxu0 %v53_v8  ;;  %908 = vmatprep.mubr.f32.mxu1 %v58_v9 }
 0x28c   :  { %v519_v12 = vmul.f32 %v930_v11, %v922_v59  ;;  %903 = vmatprep.mubr.f32.mxu0 %v56_v10 }
 0x28e   :  { %901 = vmatprep.subr.mxu0 %v519_v12 }
 0x28f   :  { %v932_v13 = vpop.eup %931  ;;  %902 = vmatpush3.xpose.msra.mxu0 %v519_v12 }
 0x290   :  { %v520_v15 = vmul.f32 %v932_v13, %v924_v60 }
 0x292   :  { %906 = vmatprep.subr.mxu1 %v520_v15  ;;  %904 = vmatmul.mubr.f32.vlgmr.msra.gmra.mxu0 %v57_v14 }
 0x293   :  { %907 = vmatpush3.xpose.msra.mxu1 %v520_v15 }
 0x296   :  { %909 = vmatmul.mubr.f32.vlgmr.msra.gmra.mxu1 %v59_v16 }
 0x34a   :  { %v900_v17 = vpop.f32.mrf.mxu1 }
 0x34b   :  { %v895_v18 = vpop.f32.mrf.mxu0  ;;  %825 = vst.msk [vmem:[%s1075_s3 + $0x18] sm:$0xff] %vm821_vm3, %v900_v17 }
 0x34c   :  { %823 = vst.msk [vmem:[%s1075_s3 + $0x8] sm:$0xff] %vm821_vm3, %v895_v18  ;;  %v662_v19 = vpop.f32.mrf.mxu1 }
 0x34d   :  { %v587_v20 = vpop.f32.mrf.mxu0  ;;  %824 = vst.msk [vmem:[%s1075_s3 + $0x10] sm:$0xff] %vm821_vm3, %v662_v19 }
 0x34e   :  { %822 = vst.msk [vmem:[%s1075_s3] sm:$0xff] %vm821_vm3, %v587_v20 }
 0x352   :  { %v905_v21 = vpop.f32.mrf.mxu0 }
 0x353   :  { %827 = vst.msk [vmem:[%s1075_s3 + $0x28] sm:$0xff] %vm821_vm3, %v905_v21 }
 0x354   :  { %v737_v22 = vpop.f32.mrf.mxu0 }
 0x355   :  { %826 = vst.msk [vmem:[%s1075_s3 + $0x20] sm:$0xff] %vm821_vm3, %v737_v22 }
 0x356   :  { %v910_v23 = vpop.f32.mrf.mxu1 }
 0x357   :  { %829 = vst.msk [vmem:[%s1075_s3 + $0x38] sm:$0xff] %vm821_vm3, %v910_v23 }
 0x358   :  { %v812_v24 = vpop.f32.mrf.mxu1 }
 0x359   :  { %828 = vst.msk [vmem:[%s1075_s3 + $0x30] sm:$0xff] %vm821_vm3, %v812_v24 }
 0x35a   :  { %834 = vsyncpa [#allocation3], 1 }

</bundles_post_ra>
